<compile_context>
chip_gen: v6e
topology: v6e:2x2x1
jax: 0.10.0
libtpu: 0.0.40
codegen_flags: <defaults>
</compile_context>

<pallas_src>
import math

import jax
import jax.numpy as jnp
from jax.experimental import pallas as pl
from jax.experimental.pallas import tpu as pltpu


def _tokenizer_kernel(p_ref, w_ref, pe_ref, o_ref):
    # p_ref : (1, TILE_N, K)  bf16 patch block of one batch element
    # w_ref : (K, Wp)         bf16 conv weight, resident across the whole grid
    # pe_ref: (TILE_N, Wp)    bf16 positional encoding block (constant over B)
    # o_ref : (1, TILE_N, Wp) f32 output block
    acc = jnp.dot(p_ref[0], w_ref[...],
                  preferred_element_type=jnp.float32)          # MXU, f32 acc
    o_ref[0] = (acc + pe_ref[...].astype(jnp.float32)).astype(o_ref.dtype)


def _sinusoidal_pe(n, d_model):
    # Matches SinusoidalPositionalEncoding1D buffer (first n rows).
    assert d_model % 2 == 0, "PE requires even d_model (same as PyTorch module)"
    position = jnp.arange(n, dtype=jnp.float32)[:, None]
    div_term = jnp.exp(jnp.arange(0, d_model, 2, dtype=jnp.float32) *
                       (-math.log(10000.0) / d_model))
    pe = jnp.zeros((n, d_model), dtype=jnp.float32)
    pe = pe.at[:, 0::2].set(jnp.sin(position * div_term))
    pe = pe.at[:, 1::2].set(jnp.cos(position * div_term))
    return pe


def img_tokenizer_pallas(x_nchw, conv_weight):
    """x_nchw: (B, C, H, W) f32; conv_weight: (width, C, p, p) f32 (bias-free)."""
    B, C, H, W = x_nchw.shape
    width, C_w, p, p2 = conv_weight.shape
    assert C == C_w and p == p2 and H % p == 0 and W % p == 0

    nh, nw = H // p, W // p
    N = nh * nw
    K = C * p * p

    # --- glue: bf16 cast BEFORE patchify so the materialized copy is half size
    xb = x_nchw.astype(jnp.bfloat16)
    # (B,C,nh,p,nw,p) -> (B,nh,nw,C,p,p) -> (B,N,K); (c,kh,kw) order matches
    # Conv2d weight flattening.
    patches = xb.reshape(B, C, nh, p, nw, p)
    patches = patches.transpose(0, 2, 4, 1, 3, 5).reshape(B, N, K)

    # Conv weight (width,C,p,p) -> (K,width) so out = patches @ w_mat ; bf16.
    w_mat = conv_weight.reshape(width, K).T.astype(jnp.bfloat16)
    pe = _sinusoidal_pe(N, width).astype(jnp.bfloat16)

    # --- lane-pad width to a multiple of 128 (unmasked stores / full MXU lanes)
    width_pad = ((width + 127) // 128) * 128
    if width_pad != width:
        w_mat = jnp.pad(w_mat, ((0, 0), (0, width_pad - width)))
        pe = jnp.pad(pe, ((0, 0), (0, width_pad - width)))

    # --- tile N into MXU-shaped blocks when divisible (else whole-N block)
    tile_n = N
    for cand in (512, 256, 128):
        if N % cand == 0:
            tile_n = cand
            break
    n_tiles = N // tile_n

    # VMEM budget estimate (double-buffered ins/outs + resident weight); only
    # raise the scoped limit when actually needed, capped v7x-safe.
    vmem_est = (2 * tile_n * K * 2 + K * width_pad * 2 +
                2 * tile_n * width_pad * 2 + 2 * tile_n * width_pad * 4)
    cp_kwargs = dict(dimension_semantics=("parallel", "parallel"))
    if vmem_est > 12 * (1 << 20):
        cp_kwargs["vmem_limit_bytes"] = min(int(vmem_est * 2), 48 * (1 << 20))
    compiler_params = pltpu.CompilerParams(**cp_kwargs)

    out_p = pl.pallas_call(
        _tokenizer_kernel,
        out_shape=jax.ShapeDtypeStruct((B, N, width_pad), jnp.float32),
        grid_spec=pltpu.PrefetchScalarGridSpec(
            num_scalar_prefetch=0,
            # n outer / b inner: PE block index is constant across the inner B
            # loop, so it is DMA'd only n_tiles times; weight is DMA'd once.
            grid=(n_tiles, B),
            in_specs=[
                pl.BlockSpec((1, tile_n, K), lambda n, b: (b, n, 0)),
                pl.BlockSpec((K, width_pad), lambda n, b: (0, 0)),
                pl.BlockSpec((tile_n, width_pad), lambda n, b: (n, 0)),
            ],
            out_specs=pl.BlockSpec((1, tile_n, width_pad),
                                   lambda n, b: (b, n, 0)),
        ),
        compiler_params=compiler_params,
    )(patches, w_mat, pe)

    return out_p[..., :width] if width_pad != width else out_p


def _reference(x_nchw, conv_weight):
    """Pure-JAX f32 reference of the PyTorch forward (for verification)."""
    B, C, H, W = x_nchw.shape
    width, _, p, _ = conv_weight.shape
    y = jax.lax.conv_general_dilated(
        x_nchw, conv_weight, window_strides=(p, p), padding="VALID",
        dimension_numbers=("NCHW", "OIHW", "NCHW"))          # (B, width, nh, nw)
    y = y.reshape(B, width, -1).transpose(0, 2, 1)           # (B, N, width)
    return y + _sinusoidal_pe(y.shape[1], width)[None]


if __name__ == "__main__":
    # Small module-consistent shapes: Conv2d requires 3 input channels.
    # B=2, C=3, 16x16 image, patch 8 -> N=4 patches, width=32.
    B, C, H, W = 2, 3, 16, 16
    width, patch_size = 32, 8

    key = jax.random.PRNGKey(0)
    kx, kw = jax.random.split(key)
    x = jax.random.normal(kx, (B, C, H, W), dtype=jnp.float32)
    conv_weight = (width ** -0.5) * jax.random.normal(
        kw, (width, C, patch_size, patch_size), dtype=jnp.float32)

    out = img_tokenizer_pallas(x, conv_weight)
    out = jax.block_until_ready(out)

    ref = _reference(x, conv_weight)
    assert out.shape == (B, (H // patch_size) * (W // patch_size), width)
    # bf16 inputs with f32 accumulation -> loosened tolerance vs f32 reference.
    assert jnp.allclose(out, ref, atol=5e-2, rtol=5e-2), \
        float(jnp.max(jnp.abs(out - ref)))

    print("KERNEL_OK")
</pallas_src>

<mosaic_0001>
module attributes {stable_mosaic.version = 11 : i64} {
  func.func @_tokenizer_kernel(%arg0: i32, %arg1: i32, %arg2: memref<1x4x192xbf16, #tpu.memory_space<vmem>>, %arg3: memref<192x128xbf16, #tpu.memory_space<vmem>>, %arg4: memref<4x128xbf16, #tpu.memory_space<vmem>>, %arg5: memref<1x4x128xf32, #tpu.memory_space<vmem>>) attributes {dimension_semantics = [#tpu.dimension_semantics<parallel>, #tpu.dimension_semantics<parallel>], iteration_bounds = array<i64: 1, 2>, scalar_prefetch = 0 : i64, scratch_operands = 0 : i64, tpu.core_type = #tpu.core_type<tc>, window_params = [{transform_indices = @transform_0, window_bounds = array<i64: 1, 4, 192>}, {pipeline_mode = #tpu.pipeline_mode<synchronous>, transform_indices = @transform_1, window_bounds = array<i64: 192, 128>}, {transform_indices = @transform_2, window_bounds = array<i64: 4, 128>}, {transform_indices = @transform_3, window_bounds = array<i64: 1, 4, 128>}]} {
    %c0 = arith.constant 0 : index
    %c0_0 = arith.constant 0 : index
    %c0_1 = arith.constant 0 : index
    %0 = vector.load %arg2[%c0, %c0_0, %c0_1] : memref<1x4x192xbf16, #tpu.memory_space<vmem>>, vector<1x4x192xbf16>
    %1 = vector.shape_cast %0 : vector<1x4x192xbf16> to vector<4x192xbf16>
    %c0_2 = arith.constant 0 : index
    %c0_3 = arith.constant 0 : index
    %2 = vector.load %arg3[%c0_2, %c0_3] : memref<192x128xbf16, #tpu.memory_space<vmem>>, vector<192x128xbf16>
    %cst = arith.constant dense<0.000000e+00> : vector<4x128xf32>
    %3 = tpu.matmul %1, %2, %cst {dimension_numbers = #tpu.dot_dimension_numbers<[1], [0], [0], [1], [0, 0, 1, 1], [], []>} : vector<4x192xbf16>, vector<192x128xbf16>, vector<4x128xf32> -> vector<4x128xf32>
    %c0_4 = arith.constant 0 : index
    %c0_5 = arith.constant 0 : index
    %4 = vector.load %arg4[%c0_4, %c0_5] : memref<4x128xbf16, #tpu.memory_space<vmem>>, vector<4x128xbf16>
    %5 = arith.extf %4 : vector<4x128xbf16> to vector<4x128xf32>
    %6 = arith.addf %3, %5 : vector<4x128xf32>
    %c0_6 = arith.constant 0 : index
    %c0_7 = arith.constant 0 : index
    %c0_8 = arith.constant 0 : index
    %7 = vector.load %arg5[%c0_6, %c0_7, %c0_8] : memref<1x4x128xf32, #tpu.memory_space<vmem>>, vector<1x4x128xf32>
    %8 = vector.shape_cast %7 : vector<1x4x128xf32> to vector<4x128xf32>
    %9 = vector.shape_cast %6 : vector<4x128xf32> to vector<1x4x128xf32>
    tpu.vector_store %arg5[%c0_6, %c0_7, %c0_8], %9 {strides = array<i32>} : memref<1x4x128xf32, #tpu.memory_space<vmem>>, vector<1x4x128xf32>,
    return
  }
  func.func @transform_0(%arg0: i32, %arg1: i32) -> (i32, i32, i32) {
    %c0_i32 = arith.constant 0 : i32
    %c0_i32_0 = arith.constant 0 : i32
    return %arg1, %arg0, %c0_i32 : i32, i32, i32
  }
  func.func @transform_1(%arg0: i32, %arg1: i32) -> (i32, i32) {
    %c0_i32 = arith.constant 0 : i32
    %c0_i32_0 = arith.constant 0 : i32
    %c0_i32_1 = arith.constant 0 : i32
    return %c0_i32, %c0_i32_0 : i32, i32
  }
  func.func @transform_2(%arg0: i32, %arg1: i32) -> (i32, i32) {
    %c0_i32 = arith.constant 0 : i32
    %c0_i32_0 = arith.constant 0 : i32
    return %arg0, %c0_i32 : i32, i32
  }
  func.func @transform_3(%arg0: i32, %arg1: i32) -> (i32, i32, i32) {
    %c0_i32 = arith.constant 0 : i32
    %c0_i32_0 = arith.constant 0 : i32
    return %arg1, %arg0, %c0_i32 : i32, i32, i32
  }
}

</mosaic_0001>

<bundles_post_ra>
// kernel: tpu_custom_call.1
= control target key start
LH: loop header
LB: loop body
LE: loop exit
PB: predicated region body
PF: predicated region fallthrough
CT: control target
= control target key end

     0   :  { %8 = vsyncpa [#allocation3], 0  ;;  %s986_s0 = inlined_call_operand.hbm [shape: bf16[2,4,192], index: 0, kind: input, shape index: {}]   ;;  %s987_s1 = inlined_call_operand.hbm [shape: bf16[192,128], index: 1, kind: input, shape index: {}]   ;;  %s988_s2 = inlined_call_operand.vmem [shape: bf16[4,128], index: 2, kind: input, shape index: {}]   ;;  %s989_s3 = inlined_call_operand.hbm [shape: f32[2,4,128], index: 3, kind: output, shape index: {}]  }
   0x1   :  { %10 = vsyncpa [#allocation3 + $0x1], 0 }
   0x2   :  { %11 = vsyncpa [#allocation6], 0 }
   0x3   :  { %12 = vsyncpa [#allocation4], 0 }
   0x4   :  { %14 = vsyncpa [#allocation4 + $0x1], 0  ;;  %s800_s12 = smov 0   ;;  %s802_s13 = smov 0  }
   0x5   :  { %s804_s14 = smov 0   ;;  %s806_s15 = smov 0  }
   0x6   :  { %s808_s16 = smov 0   ;;  %s810_s17 = smov 0  }
   0x7 LB: > { %s514_s18 = sadd.s32 4294967295, %s772_s17   ;;  %s515_s19 = sadd.s32 4294967294, %s772_s17   ;;  %s772_s17 = sphi %s810_s17, %s20_s17   ;;  %s768_s16 = sphi %s808_s16, %s1007_s16   ;;  %s764_s15 = sphi %s806_s15, %s1006_s15   ;;  %s760_s14 = sphi %s804_s14, %s1005_s14   ;;  %s756_s13 = sphi %s802_s13, %s1004_s13   ;;  %s752_s12 = sphi %s800_s12, %s1003_s12  }
   0x8   : > { %p54_p0 = scmp.ne.s32.totalorder %s756_s13, %s752_s12  ;;  %p834_p1 = scmp.eq.s32.totalorder %s514_s18, 0 }
   0x9   : > { %p838_p2 = scmp.eq.s32.totalorder %s514_s18, 1  ;;  %p133_p3 = scmp.eq.s32.totalorder %s515_s19, 1 }
   0xa   : > { %p844_p4 = por %p834_p1, %p54_p0  ;;  %p516_p5 = scmp.ge.s32.totalorder %s772_s17, 1 }
   0xb   : > { %p849_p6 = por %p133_p3, %p54_p0  ;;  %p140_p7 = scmp.lt.s32.totalorder %s772_s17, 3 }
   0xc   : > { %s993_s22 = scalar_select %p844_p4, 1, 0 }
   0xd   : > { %s994_s23 = scalar_select %p849_p6, 1, 0 }
   0xe   : > { %p854_p8 = pnand %p516_p5, %p140_p7  ;;  %s774_s25 = smov [#allocation5]  }
   0xf   : > { %s152_s26 = sshll.u32 %s774_s25, 4  ;;  %s29_s28 = sadd.s32 1, %s768_s16  ;;  %s153_s26 = int_to_ptr.vmem [resolvable:$true] %s152_s26 }
  0x10   : > { %p554_p9 = pneg %p854_p8  ;;  %s645_s29 = scalar_lea.vmem %s153_s26, 1536 }
  0x11   : > { %p646_p13 = scmp.ne.s32.totalorder %s153_s26, %s645_s29  ;;  %p653_p5 = scmp.lt.s32.totalorder %s153_s26, %s153_s26 }
  0x12   : > { %p863_p11 = pnand %p554_p9, %p834_p1  ;;  %p654_p7 = scmp.lt.s32.totalorder %s645_s29, %s645_s29 }
  0x14   : > { %p636_p12 = pneg %p863_p11  ;;  %p655_p6 = por %p654_p7, %p653_p5 }
  0x16   : > { %p648_p0 = pnand %p646_p13, %p636_p12 }
  0x18   : > { %p649_p3 = pneg %p648_p0 }
  0x1a   : > { %p656_p4 = pnand %p655_p6, %p649_p3 }
  0x1c   : > { %659 = shalt.err (!%p656_p4)
}
  0x1d   : > { %s775_s30 = smov 64   ;;  %s776_s4 = smov 4  }
  0x1e   : > { %557 = dma.hbm_to_vmem [thread:$0]  (!%p863_p11), %s987_s1, 1536, %s153_s26, [#allocation6], %s775_s30, %s775_s30, %s776_s4  }
  0x1f   : > { %p30_p6 = scmp.ge.s32.totalorder %s29_s28, 2  ;;  %s41_s7 = sadd.s32 1, %s760_s14 }
  0x20   : > { %p48_p4 = scmp.ne.s32.totalorder %s760_s14, %s756_s13  ;;  %p49_p9 = scmp.eq.s32.totalorder %s772_s17, 0 }
  0x21   : > { %s1009_s28 = smov (%p30_p6, %s29_s28), 0  ;;  %p567_p0 = scmp.lt.s32.totalorder %s772_s17, 2 }
  0x22   : > { %p881_p12 = por %p49_p9, %p48_p4  ;;  %p887_p13 = por %p838_p2, %p48_p4 }
  0x23   : > { %s36_s10 = ssub.s32 %s768_s16, %s1009_s28  ;;  %s173_s11 = sand.u32 1, %s760_s14  }
  0x24   : > { %p39_p11 = scmp.eq.s32.totalorder %s36_s10, 0  ;;  %s520_s18 = sshll.u32 %s173_s11, 2 }
  0x25   : > { %s545_s25 = sshll.u32 %s768_s16, 6  ;;  %s177_s30 = scalar_lea.vmem [#allocation2], %s520_s18 }
  0x26   : > { %s896_s19 = scalar_select %p39_p11, %s760_s14, %s41_s7  }
  0x27   : > { %s185_s29 = scalar_lea.hbm %s986_s0, %s545_s25  ;;  %s187_s4 = sshll.u32 %s177_s30, 4  ;;  %s188_s4 = int_to_ptr.vmem [resolvable:$true] %s187_s4 }
  0x28   : > { %p904_p2 = pnand %p567_p0, %p881_p12  ;;  %s174_s5 = scalar_lea.sflag [#allocation3], %s173_s11 }
  0x29   : > { %s673_s6 = scalar_lea.vmem %s188_s4, 64  ;;  %s777_s7 = smov [#allocation2]  }
  0x2a   : > { %p662_p3 = pneg %p904_p2  ;;  %p674_p5 = scmp.ne.s32.totalorder %s188_s4, %s673_s6 }
  0x2b   : > { %s678_s10 = sshll.u32 %s777_s7, 4  ;;  %s679_s10 = int_to_ptr.vmem [resolvable:$false] %s678_s10 }
  0x2c   : > { %p676_p7 = pnand %p674_p5, %p662_p3  ;;  %s680_s25 = scalar_lea.vmem %s679_s10, 128 }
  0x2d   : > { %p681_p4 = scmp.lt.s32.totalorder %s188_s4, %s679_s10  ;;  %p682_p9 = scmp.lt.s32.totalorder %s680_s25, %s673_s6 }
  0x2e   : > { %p677_p6 = pneg %p676_p7 }
  0x2f   : > { %p683_p11 = por %p682_p9, %p681_p4 }
  0x31   : > { %p684_p10 = pnand %p683_p11, %p677_p6 }
  0x33   : > { %687 = shalt.err (!%p684_p10)
}
  0x34   : > { %561 = dma.hbm_to_vmem [thread:$0]  (!%p904_p2), %s185_s29, 64, %s188_s4, %s174_s5  }
  0x35   : > { %196 = sbr.rel (%p854_p8) target bundleno = 319 (0x13f), region = 32  ;;  %s915_s8 = sand.u32 (!%p854_p8), 1, %s756_s13  }
  0x36   : > { %s524_s11 = sshll.u32 (!%p854_p8), %s915_s8, 2  ;;  %s199_s18 = scalar_lea.sflag (!%p854_p8), [#allocation3], %s915_s8 }
  0x37   : > { %s202_s26 = scalar_lea.vmem (!%p854_p8), [#allocation2], %s524_s11  ;;  %p1000_p12 = scmp.ne.s32.totalorder (!%p854_p8), %s993_s22, 0 }
  0x3a   : > { %739 = dma.done.wait (%p1000_p12), %s199_s18, 64  }
  0x3b   : > { %741 = vsyncadd (%p1000_p12), %s199_s18, 4294967232 }
  0x3c   : > { %743 = dma.done.wait (%p834_p1), [#allocation6], 1536  }
  0x3d   : > { %745 = vsyncadd (%p834_p1), [#allocation6], 4294965760  ;;  %v778_v0 = vmov 0   ;;  %v622_v1 = vld [vmem:[#allocation5 + $0x38] sm:$0xff]   ;;  %v623_v2 = vld [vmem:[#allocation5 + $0x30] sm:$0xff]   ;;  %vm347_vm0 = vcmask 523264  }
  0x3e   : > { %351 = vmatprep.subr.bf16.mxu0 %v778_v0  ;;  %v624_v3 = vld [vmem:[#allocation5 + $0x28] sm:$0xff]   ;;  %v625_v4 = vld [vmem:[#allocation5 + $0x20] sm:$0xff]   ;;  %v527_v5 = vld.sshfl [vmem:[%s202_s26] sm:$0x33 pattern:$0x76325410] }
  0x3f   : > { %352 = vmatpush1.bf16.msra.mxu0 %v622_v1  ;;  %v273_v6 = vcombine.high %v527_v5, %v527_v5  ;;  %v626_v7 = vld [vmem:[#allocation5 + $0x18] sm:$0xff]   ;;  %v627_v8 = vld [vmem:[#allocation5 + $0x10] sm:$0xff]   ;;  %v628_v9 = vld [vmem:[#allocation5 + $0x8] sm:$0xff]   ;;  %s542_s24 = sshll.u32 %s764_s15, 6  ;;  %s232_s27 = scalar_lea.vmem [#allocation7], %s524_s11 }
  0x40   : > { %353 = vmatprep.subr.bf16.mxu0 %v778_v0  ;;  %v629_v10 = vld [vmem:[#allocation5] sm:$0xff]   ;;  %v630_v11 = vld [vmem:[#allocation5 + $0x58] sm:$0xff]   ;;  %v631_v12 = vld [vmem:[#allocation5 + $0x50] sm:$0xff]   ;;  %s407_s29 = sshll.u32 %s232_s27, 4  ;;  %s938_s21 = scalar_lea.hbm %s989_s3, %s542_s24  ;;  %s940_s29 = int_to_ptr.vmem [resolvable:$true] %s407_s29 }
  0x41   : > { %540 = vmatprep.mubr.msk.bf16.mxu0 %vm347_vm0, %v273_v6  ;;  %v632_v13 = vld [vmem:[#allocation5 + $0x48] sm:$0xff]   ;;  %v633_v14 = vld [vmem:[#allocation5 + $0x40] sm:$0xff]   ;;  %v263_v15 = vld [vmem:[%s988_s2] sm:$0x3]  ;;  %s393_s5 = scalar_lea.sflag [#allocation4], %s915_s8  ;;  %s688_s15 = scalar_lea.vmem %s940_s29, 64 }
  0x42   : > { %v264_v16 = vunpack.c.l.bf16 %v263_v15  ;;  %p689_p1 = scmp.ne.s32.totalorder %s940_s29, %s688_s15  ;;  %s779_s6 = smov [#allocation7]  }
  0x43   : > { %354 = vmatpush1.bf16.msra.mxu0 %v623_v2  ;;  %s692_s7 = sshll.u32 %s779_s6, 4  ;;  %s693_s7 = int_to_ptr.vmem [resolvable:$false] %s692_s7 }
  0x44   : > { %355 = vmatprep.subr.bf16.mxu0 %v778_v0  ;;  %p690_p8 = pnand %p689_p1, %p887_p13  ;;  %s694_s10 = scalar_lea.vmem %s693_s7, 128 }
  0x45   : > { %p695_p0 = scmp.lt.s32.totalorder %s940_s29, %s693_s7  ;;  %p696_p2 = scmp.lt.s32.totalorder %s694_s10, %s688_s15 }
  0x46   : > { %p691_p10 = pneg %p690_p8 }
  0x47   : > { %356 = vmatpush1.bf16.msra.mxu0 %v624_v3  ;;  %p697_p3 = por %p696_p2, %p695_p0 }
  0x48   : > { %357 = vmatprep.subr.bf16.mxu0 %v778_v0 }
  0x49   : > { %p698_p5 = pnand %p697_p3, %p691_p10 }
  0x4b   : > { %358 = vmatpush1.bf16.msra.mxu0 %v625_v4 }
  0x4c   : > { %359 = vmatprep.subr.bf16.mxu0 %v778_v0 }
  0x4f   : > { %360 = vmatpush1.bf16.msra.mxu0 %v626_v7 }
  0x50   : > { %361 = vmatprep.subr.bf16.mxu0 %v778_v0 }
  0x53   : > { %362 = vmatpush1.bf16.msra.mxu0 %v627_v8 }
  0x54   : > { %363 = vmatprep.subr.bf16.mxu0 %v778_v0 }
  0x57   : > { %364 = vmatpush1.bf16.msra.mxu0 %v628_v9 }
  0x58   : > { %365 = vmatprep.subr.bf16.mxu0 %v778_v0 }
  0x5b   : > { %366 = vmatpush1.bf16.msra.mxu0 %v629_v10 }
  0x5c   : > { %375 = vmatprep.subr.bf16.mxu0 %v778_v0 }
  0x5f   : > { %376 = vmatpush2.bf16.msra.mxu0 %v630_v11 }
  0x60   : > { %377 = vmatprep.subr.bf16.mxu0 %v778_v0 }
  0x63   : > { %378 = vmatpush2.bf16.msra.mxu0 %v631_v12 }
  0x64   : > { %379 = vmatprep.subr.bf16.mxu0 %v778_v0 }
  0x67   : > { %380 = vmatpush2.bf16.msra.mxu0 %v632_v13 }
  0x68   : > { %381 = vmatprep.subr.bf16.mxu0 %v778_v0 }
  0x6b   : > { %382 = vmatpush2.bf16.msra.mxu0 %v633_v14 }
  0x6e   : > { %384 = vmatmul.mubr.bf16.vlgmr.msra.gmra.mxu0 %v527_v5 }
 0x12e   : > { %v385_v17 = vpop.f32.mrf.mxu0 }
 0x12f   : > { %v386_v18 = vadd.f32 %v385_v17, %v264_v16 }
 0x130   : > { %v387_v19 = vpop.f32.mrf.mxu0 }
 0x131   : > { %391 = vst [vmem:[%s232_s27] sm:$0xf] %v386_v18 }
 0x132   : > { %v388_v20 = vpop.f32.mrf.mxu0 }
 0x133   : > { %701 = shalt.err (!%p698_p5)
}
 0x134   : > { %s702_s25 = scalar_lea.hbm %s938_s21, 64  ;;  %s706_s18 = scalar_lea.hbm %s989_s3, 128 }
 0x135   : > { %p703_p7 = scmp.ne.s32.totalorder %s938_s21, %s702_s25  ;;  %p707_p9 = scmp.lt.s32.totalorder %s938_s21, %s989_s3 }
 0x136   : > { %p708_p11 = scmp.lt.s32.totalorder %s706_s18, %s702_s25 }
 0x137   : > { %p704_p6 = pnand %p703_p7, %p887_p13 }
 0x138   : > { %p709_p12 = por %p708_p11, %p707_p9 }
 0x139   : > { %p705_p4 = pneg %p704_p6 }
 0x13b   : > { %p710_p1 = pnand %p709_p12, %p705_p4 }
 0x13d   : > { %713 = shalt.err (!%p710_p1)
}
 0x13e   : > { %552 = dma.vmem_to_hbm [thread:$0]  (%p887_p13), %s940_s29, 64, %s938_s21, %s393_s5   ;;  %v389_v21 = vpop.f32.mrf.mxu0 }
 0x13f PF: > { %s419_s22 = sand.u32 1, %s752_s12   ;;  %p1001_p8 = scmp.ne.s32.totalorder %s994_s23, 0 }
 0x140   : > { %p1002_p10 = scmp.ge.s32.totalorder %s772_s17, 2  ;;  %s420_s24 = scalar_lea.sflag [#allocation4], %s419_s22 }
 0x142   : > { %p563_p0 = pnand %p1002_p10, %p1001_p8 }
 0x144   : > { %p564_p2 = pneg %p563_p0 }
 0x146   : > { %747 = dma.done.wait (%p564_p2), %s420_s24, 64  }
 0x147   : > { %749 = vsyncadd (%p564_p2), %s420_s24, 4294967232  ;;  %s20_s17 = sadd.s32 1, %s772_s17   ;;  %s1003_s12 = smov %s756_s13 }
 0x148   : > { %p17_p3 = scmp.ge.s32.totalorder %s20_s17, 4   ;;  %s1004_s13 = smov %s760_s14 }
 0x149   : > { %s1005_s14 = smov %s896_s19  ;;  %s1006_s15 = smov %s768_s16 }
 0x14a   : > { %s1007_s16 = smov %s1009_s28  ;;  %19 = sbr.rel (!%p17_p3) target bundleno = 7 (0x7), region = 84 }
 0x14f   :  { %425 = vsyncpa [#allocation3], 1 }
 0x150   :  { %427 = vsyncpa [#allocation3 + $0x1], 1 }
 0x151   :  { %428 = vsyncpa [#allocation6], 1 }
 0x152   :  { %429 = vsyncpa [#allocation4], 1 }
 0x153   :  { %431 = vsyncpa [#allocation4 + $0x1], 1 }

</bundles_post_ra>
